<compile_context>
chip_gen: v7x
topology: tpu7x:2x2x1
jax: 0.10.0
libtpu: 0.0.40
codegen_flags: <defaults>
</compile_context>

<pallas_src>
import numpy as np
import jax
import jax.numpy as jnp
from jax import lax
from jax.experimental import pallas as pl
from jax.experimental.pallas import tpu as pltpu

_LANE = 128
_SUB = 8


def _round_up(x, m):
    return (x + m - 1) // m * m


def _pick_tile(n_pad, cap=1024):
    # biggest tile <= cap that divides n_pad (n_pad is always a multiple of 128)
    for t in (1024, 512, 256, 128):
        if t <= cap and n_pad % t == 0:
            return t
    return 128


# ---------------- 1) node embedder (time-conditioned MLP) --------------------

def _embed_kernel(x_ref, w1_ref, b1_ref, w2_ref, b2_ref, e_ref):
    # h = relu([x, t] @ [[W1],[Wt]] + b1);  e = h @ W2 + b2
    # (diffusion time is folded into x as an extra feature column by the
    #  wrapper, removing the rank-1 K=1 matmul)
    h = jnp.dot(x_ref[...], w1_ref[...], preferred_element_type=jnp.float32)
    h = jnp.maximum(h + b1_ref[...], 0.0)
    e = jnp.dot(h, w2_ref[...], preferred_element_type=jnp.float32) + b2_ref[...]
    e_ref[...] = e.astype(e_ref.dtype)


# ---------------- 2) pairwise pass: per-tile min/max only (no s writeback) ---

def _make_minmax_kernel(tm, tn, n_valid):
    def kernel(ei_ref, ej_ref, min_ref, max_ref):
        i = pl.program_id(0)
        j = pl.program_id(1)

        # bf16 operands, f32 accumulation on the MXU: s = e_i @ e_j.T
        s = lax.dot_general(ei_ref[...], ej_ref[...],
                            (((1,), (1,)), ((), ())),
                            preferred_element_type=jnp.float32)   # (tm, tn)

        is_edge = jnp.logical_or(i == pl.num_programs(0) - 1,
                                 j == pl.num_programs(1) - 1)

        # interior tiles: plain reductions, no mask work on the hot path
        @pl.when(jnp.logical_not(is_edge))
        def _():
            min_ref[...] = jnp.full((_SUB, _LANE), jnp.min(s))
            max_ref[...] = jnp.full((_SUB, _LANE), jnp.max(s))

        # edge tiles only: exclude padded rows/cols (built from 1-D iotas)
        @pl.when(is_edge)
        def _():
            row_ok = (i * tm + lax.broadcasted_iota(jnp.int32, (tm, 1), 0)) < n_valid
            col_ok = (j * tn + lax.broadcasted_iota(jnp.int32, (1, tn), 1)) < n_valid
            valid = jnp.logical_and(row_ok, col_ok)
            big = jnp.float32(3.0e38)
            min_ref[...] = jnp.full((_SUB, _LANE), jnp.min(jnp.where(valid, s, big)))
            max_ref[...] = jnp.full((_SUB, _LANE), jnp.max(jnp.where(valid, s, -big)))

    return kernel


# ---------------- 3) per-graph diagonal blocks, normalized in-kernel ---------

def _diag_kernel(mM_ref, ei_ref, ej_ref, out_ref):
    m = mM_ref[0]
    inv = 1.0 / (mM_ref[1] - m + 1e-7)        # same epsilon placement as reference
    s = lax.dot_general(ei_ref[0], ej_ref[0],
                        (((1,), (1,)), ((), ())),
                        preferred_element_type=jnp.float32)   # (tb, tb) f32
    out_ref[0] = (s - m) * inv


# ---------------- wrapper -----------------------------------------------------

def link_predictor_forward(x, t_per_graph, graph_sizes, params):
    """x: (N, F) node features; t_per_graph: (num_graphs,) diffusion times.

    Returns the flattened strict-upper-triangular block-diagonal similarities,
    shape (sum_i g_i*(g_i-1)/2,) — matching `similarities[mask]` in PyTorch.
    """
    N, F = x.shape
    H = params["w1"].shape[1]
    D = params["w2"].shape[1]
    graph_sizes = [int(g) for g in graph_sizes]
    num_graphs = len(graph_sizes)
    assert sum(graph_sizes) == N

    # ---- fold per-graph time into the node features (extra column) ----------
    t_node = jnp.repeat(t_per_graph.astype(jnp.float32),
                        jnp.asarray(graph_sizes),
                        total_repeat_length=N).reshape(N, 1)
    x_aug = jnp.concatenate([x.astype(jnp.float32), t_node], axis=1)       # (N, F+1)
    w1_aug = jnp.concatenate([params["w1"], params["wt"]], axis=0)         # (F+1, H)

    # ---- pad to lane / MXU friendly sizes ------------------------------------
    N_pad = _round_up(max(N, _LANE), _LANE)
    F_pad = _round_up(F + 1, _SUB)          # K dim: only pad to a sublane multiple
    H_pad = _round_up(H, _LANE)
    D_pad = _round_up(D, _LANE)

    def pad2(a, r, c):
        return jnp.pad(a, ((0, r - a.shape[0]), (0, c - a.shape[1])))

    x_p = pad2(x_aug, N_pad, F_pad)
    w1_p = pad2(w1_aug, F_pad, H_pad)
    b1_p = pad2(params["b1"], 1, H_pad)
    w2_p = pad2(params["w2"], H_pad, D_pad)
    b2_p = pad2(params["b2"], 1, D_pad)

    # ---- 1) node embeddings, row-tiled; weights stay resident ---------------
    tm_e = _pick_tile(N_pad, cap=1024)
    e = pl.pallas_call(
        _embed_kernel,
        out_shape=jax.ShapeDtypeStruct((N_pad, D_pad), jnp.bfloat16),
        grid=(N_pad // tm_e,),
        in_specs=[
            pl.BlockSpec((tm_e, F_pad), lambda i: (i, 0)),
            pl.BlockSpec((F_pad, H_pad), lambda i: (0, 0)),
            pl.BlockSpec((1, H_pad), lambda i: (0, 0)),
            pl.BlockSpec((H_pad, D_pad), lambda i: (0, 0)),
            pl.BlockSpec((1, D_pad), lambda i: (0, 0)),
        ],
        out_specs=pl.BlockSpec((tm_e, D_pad), lambda i: (i, 0)),
        compiler_params=pltpu.CompilerParams(
            dimension_semantics=("parallel",)),
    )(x_p, w1_p, b1_p, w2_p, b2_p)

    # ---- 2) global min/max of e @ e.T, no similarity writeback --------------
    tm = tn = _pick_tile(N_pad, cap=1024)
    gi, gj = N_pad // tm, N_pad // tn
    tile_min, tile_max = pl.pallas_call(
        _make_minmax_kernel(tm, tn, N),
        out_shape=(
            jax.ShapeDtypeStruct((gi * _SUB, gj * _LANE), jnp.float32),
            jax.ShapeDtypeStruct((gi * _SUB, gj * _LANE), jnp.float32),
        ),
        grid=(gi, gj),
        in_specs=[
            pl.BlockSpec((tm, D_pad), lambda i, j: (i, 0)),
            pl.BlockSpec((tn, D_pad), lambda i, j: (j, 0)),
        ],
        out_specs=(
            pl.BlockSpec((_SUB, _LANE), lambda i, j: (i, j)),
            pl.BlockSpec((_SUB, _LANE), lambda i, j: (i, j)),
        ),
        compiler_params=pltpu.CompilerParams(
            dimension_semantics=("parallel", "parallel")),
    )(e, e)

    m = jnp.min(tile_min)
    M = jnp.max(tile_max)
    mM = jnp.stack([m, M]).astype(jnp.float32)          # (2,) scalars -> SMEM

    # ---- 3) per-graph diagonal blocks, normalized in-kernel ------------------
    g_max = max(graph_sizes)
    g_pad = _round_up(g_max, _LANE)                      # lane-dense output blocks
    offsets = np.concatenate([[0], np.cumsum(graph_sizes)[:-1]]).astype(np.int64)

    # gather each graph's embedding rows into a (num_graphs, g_pad, D_pad) slab
    row_idx = np.zeros((num_graphs, g_pad), dtype=np.int32)
    for k, (off, g) in enumerate(zip(offsets, graph_sizes)):
        row_idx[k, :g] = np.arange(off, off + g, dtype=np.int32)
    e_groups = jnp.take(e, jnp.asarray(row_idx.reshape(-1)), axis=0)
    e_groups = e_groups.reshape(num_graphs, g_pad, D_pad)

    tb = _pick_tile(g_pad, cap=512)
    nb = g_pad // tb
    sim_blocks = pl.pallas_call(
        _diag_kernel,
        out_shape=jax.ShapeDtypeStruct((num_graphs, g_pad, g_pad), jnp.float32),
        grid=(num_graphs, nb, nb),
        in_specs=[
            pl.BlockSpec(memory_space=pltpu.MemorySpace.SMEM),          # (m, M)
            pl.BlockSpec((1, tb, D_pad), lambda g, bi, bj: (g, bi, 0)),
            pl.BlockSpec((1, tb, D_pad), lambda g, bi, bj: (g, bj, 0)),
        ],
        out_specs=pl.BlockSpec((1, tb, tb), lambda g, bi, bj: (g, bi, bj)),
        compiler_params=pltpu.CompilerParams(
            dimension_semantics=("parallel", "parallel", "parallel")),
    )(mM, e_groups, e_groups)

    # ---- 4) static strict-upper-triangular gather over the per-graph blocks --
    # (small per-axis indices -> no flattened-index int32 overflow at large N)
    gi_l, ri_l, ci_l = [], [], []
    for k, g in enumerate(graph_sizes):
        r, c = np.triu_indices(g, k=1)
        gi_l.append(np.full(r.shape, k, dtype=np.int32))
        ri_l.append(r.astype(np.int32))
        ci_l.append(c.astype(np.int32))
    g_idx = jnp.asarray(np.concatenate(gi_l))
    r_idx = jnp.asarray(np.concatenate(ri_l))
    c_idx = jnp.asarray(np.concatenate(ci_l))
    return sim_blocks[g_idx, r_idx, c_idx]


# ---------------- params / reference ------------------------------------------

def init_params(key, feature_dim, hidden_dim):
    k1, k2, k3 = jax.random.split(key, 3)
    s1 = 1.0 / np.sqrt(feature_dim)
    s2 = 1.0 / np.sqrt(hidden_dim)
    return {
        "w1": jax.random.uniform(k1, (feature_dim, hidden_dim), jnp.float32, -s1, s1),
        "b1": jnp.zeros((1, hidden_dim), jnp.float32),
        "wt": jax.random.uniform(k2, (1, hidden_dim), jnp.float32, -1.0, 1.0),
        "w2": jax.random.uniform(k3, (hidden_dim, hidden_dim), jnp.float32, -s2, s2),
        "b2": jnp.zeros((1, hidden_dim), jnp.float32),
    }


def _reference_forward(x, t_per_graph, graph_sizes, params):
    N = x.shape[0]
    t_node = np.repeat(np.asarray(t_per_graph), graph_sizes).reshape(N, 1)
    x_aug = np.concatenate([np.asarray(x), t_node], axis=1)
    w1_aug = np.concatenate([params["w1"], params["wt"]], axis=0)
    h = np.maximum(x_aug @ w1_aug + params["b1"], 0.0)
    e = h @ params["w2"] + params["b2"]
    s = e @ e.T
    m, M = s.min(), s.max()
    s = (s - m) / (M - m + 1e-7)
    mask = np.zeros((N, N), dtype=bool)
    off = 0
    for g in graph_sizes:
        mask[off:off + g, off:off + g] = np.triu(np.ones((g, g), dtype=bool), k=1)
        off += g
    return s[mask]


if __name__ == "__main__":
    key = jax.random.PRNGKey(0)
    kx, kt, kp = jax.random.split(key, 3)

    feature_dim = 8
    hidden_dim = 32
    graph_sizes = [8, 8]            # two graphs of 8 nodes -> N = 16 total nodes
    N = sum(graph_sizes)

    x = jax.random.normal(kx, (N, feature_dim), jnp.float32)       # node features
    t = jax.random.uniform(kt, (len(graph_sizes),), jnp.float32)   # per-graph time
    params = init_params(kp, feature_dim, hidden_dim)

    out = jax.block_until_ready(link_predictor_forward(x, t, graph_sizes, params))

    expected_len = sum(g * (g - 1) // 2 for g in graph_sizes)
    assert out.shape == (expected_len,), out.shape
    assert bool(jnp.all(jnp.isfinite(out)))

    ref = _reference_forward(np.asarray(x), np.asarray(t), graph_sizes,
                             {k: np.asarray(v) for k, v in params.items()})
    err = float(np.max(np.abs(np.asarray(out) - ref)))
    assert err < 5e-2, f"max abs error vs f32 reference: {err}"

    print("KERNEL_OK")
</pallas_src>

<mosaic_0001>
module attributes {stable_mosaic.version = 11 : i64} {
  func.func @_embed_kernel(%arg0: i32, %arg1: memref<128x16xf32, #tpu.memory_space<vmem>>, %arg2: memref<16x128xf32, #tpu.memory_space<vmem>>, %arg3: memref<1x128xf32, #tpu.memory_space<vmem>>, %arg4: memref<128x128xf32, #tpu.memory_space<vmem>>, %arg5: memref<1x128xf32, #tpu.memory_space<vmem>>, %arg6: memref<128x128xbf16, #tpu.memory_space<vmem>>) attributes {dimension_semantics = [#tpu.dimension_semantics<parallel>], iteration_bounds = array<i64: 1>, scalar_prefetch = 0 : i64, scratch_operands = 0 : i64, tpu.core_type = #tpu.core_type<tc>, window_params = [{transform_indices = @transform_0, window_bounds = array<i64: 128, 16>}, {pipeline_mode = #tpu.pipeline_mode<synchronous>, transform_indices = @transform_1, window_bounds = array<i64: 16, 128>}, {pipeline_mode = #tpu.pipeline_mode<synchronous>, transform_indices = @transform_2, window_bounds = array<i64: 1, 128>}, {pipeline_mode = #tpu.pipeline_mode<synchronous>, transform_indices = @transform_3, window_bounds = array<i64: 128, 128>}, {pipeline_mode = #tpu.pipeline_mode<synchronous>, transform_indices = @transform_4, window_bounds = array<i64: 1, 128>}, {transform_indices = @transform_5, window_bounds = array<i64: 128, 128>}]} {
    %c0 = arith.constant 0 : index
    %c0_0 = arith.constant 0 : index
    %0 = vector.load %arg1[%c0, %c0_0] : memref<128x16xf32, #tpu.memory_space<vmem>>, vector<128x16xf32>
    %c0_1 = arith.constant 0 : index
    %c0_2 = arith.constant 0 : index
    %1 = vector.load %arg2[%c0_1, %c0_2] : memref<16x128xf32, #tpu.memory_space<vmem>>, vector<16x128xf32>
    %cst = arith.constant dense<0.000000e+00> : vector<128x128xf32>
    %2 = tpu.matmul %0, %1, %cst {dimension_numbers = #tpu.dot_dimension_numbers<[1], [0], [0], [1], [0, 0, 1, 1], [], []>} : vector<128x16xf32>, vector<16x128xf32>, vector<128x128xf32> -> vector<128x128xf32>
    %c0_3 = arith.constant 0 : index
    %c0_4 = arith.constant 0 : index
    %3 = vector.load %arg3[%c0_3, %c0_4] : memref<1x128xf32, #tpu.memory_space<vmem>>, vector<1x128xf32>
    %4 = vector.broadcast %3 : vector<1x128xf32> to vector<128x128xf32>
    %5 = arith.addf %2, %4 : vector<128x128xf32>
    %cst_5 = arith.constant 0.000000e+00 : f32
    %6 = vector.broadcast %cst_5 : f32 to vector<128x128xf32>
    %7 = arith.maximumf %5, %6 : vector<128x128xf32>
    %c0_6 = arith.constant 0 : index
    %c0_7 = arith.constant 0 : index
    %8 = vector.load %arg4[%c0_6, %c0_7] : memref<128x128xf32, #tpu.memory_space<vmem>>, vector<128x128xf32>
    %cst_8 = arith.constant dense<0.000000e+00> : vector<128x128xf32>
    %9 = tpu.matmul %7, %8, %cst_8 {dimension_numbers = #tpu.dot_dimension_numbers<[1], [0], [0], [1], [0, 0, 1, 1], [], []>} : vector<128x128xf32>, vector<128x128xf32>, vector<128x128xf32> -> vector<128x128xf32>
    %c0_9 = arith.constant 0 : index
    %c0_10 = arith.constant 0 : index
    %10 = vector.load %arg5[%c0_9, %c0_10] : memref<1x128xf32, #tpu.memory_space<vmem>>, vector<1x128xf32>
    %11 = vector.broadcast %10 : vector<1x128xf32> to vector<128x128xf32>
    %12 = arith.addf %9, %11 : vector<128x128xf32>
    %13 = arith.truncf %12 : vector<128x128xf32> to vector<128x128xbf16>
    %c0_11 = arith.constant 0 : index
    %c0_12 = arith.constant 0 : index
    %14 = vector.load %arg6[%c0_11, %c0_12] : memref<128x128xbf16, #tpu.memory_space<vmem>>, vector<128x128xbf16>
    tpu.vector_store %arg6[%c0_11, %c0_12], %13 {strides = array<i32>} : memref<128x128xbf16, #tpu.memory_space<vmem>>, vector<128x128xbf16>,
    return
  }
  func.func @transform_0(%arg0: i32) -> (i32, i32) {
    %c0_i32 = arith.constant 0 : i32
    %c0_i32_0 = arith.constant 0 : i32
    return %arg0, %c0_i32 : i32, i32
  }
  func.func @transform_1(%arg0: i32) -> (i32, i32) {
    %c0_i32 = arith.constant 0 : i32
    %c0_i32_0 = arith.constant 0 : i32
    %c0_i32_1 = arith.constant 0 : i32
    return %c0_i32, %c0_i32_0 : i32, i32
  }
  func.func @transform_2(%arg0: i32) -> (i32, i32) {
    %c0_i32 = arith.constant 0 : i32
    %c0_i32_0 = arith.constant 0 : i32
    %c0_i32_1 = arith.constant 0 : i32
    return %c0_i32, %c0_i32_0 : i32, i32
  }
  func.func @transform_3(%arg0: i32) -> (i32, i32) {
    %c0_i32 = arith.constant 0 : i32
    %c0_i32_0 = arith.constant 0 : i32
    %c0_i32_1 = arith.constant 0 : i32
    return %c0_i32, %c0_i32_0 : i32, i32
  }
  func.func @transform_4(%arg0: i32) -> (i32, i32) {
    %c0_i32 = arith.constant 0 : i32
    %c0_i32_0 = arith.constant 0 : i32
    %c0_i32_1 = arith.constant 0 : i32
    return %c0_i32, %c0_i32_0 : i32, i32
  }
  func.func @transform_5(%arg0: i32) -> (i32, i32) {
    %c0_i32 = arith.constant 0 : i32
    %c0_i32_0 = arith.constant 0 : i32
    return %arg0, %c0_i32 : i32, i32
  }
}

</mosaic_0001>

<bundles_post_ra>
// kernel: tpu_custom_call.1
= control target key start
LH: loop header
LB: loop body
LE: loop exit
PB: predicated region body
PF: predicated region fallthrough
CT: control target
= control target key end

     0   :  { %vm46_vm0 = vcmask 130048   ;;  %s999_s0 = inlined_call_operand.vmem [shape: f32[128,16], index: 0, kind: input, shape index: {}]   ;;  %s1000_s1 = inlined_call_operand.vmem [shape: f32[16,128], index: 1, kind: input, shape index: {}]   ;;  %s1001_s2 = inlined_call_operand.vmem [shape: f32[1,128], index: 2, kind: input, shape index: {}]   ;;  %s1002_s3 = inlined_call_operand.vmem [shape: f32[128,128], index: 3, kind: input, shape index: {}]   ;;  %s1003_s4 = inlined_call_operand.vmem [shape: f32[1,128], index: 4, kind: input, shape index: {}]   ;;  %s1004_s5 = inlined_call_operand.hbm [shape: bf16[128,128], index: 5, kind: output, shape index: {}]  }
   0x1   :  { %v37_v0 = vld [vmem:[%s1000_s1] sm:$0xff]  ;;  %v38_v1 = vld [vmem:[%s1000_s1 + $0x8] sm:$0xff]  ;;  %v23_v5 = vld [vmem:[%s999_s0 + $0x10] sm:$0xff] }
   0x2   :  { %v21_v2 = vld [vmem:[%s999_s0] sm:$0xff]  ;;  %v751_v3 = vpack.c.bf16 %v38_v1, %v37_v0  ;;  %v22_v4 = vld [vmem:[%s999_s0 + $0x8] sm:$0xff]  ;;  %v258_v8 = vld [vmem:[%s1002_s3 + $0x10] sm:$0xff] }
   0x3   :  { %671 = vmatprep.mubr.msk.f32.mxu0 %vm46_vm0, %v21_v2  ;;  %v256_v6 = vld [vmem:[%s1002_s3] sm:$0xff]  ;;  %v257_v7 = vld [vmem:[%s1002_s3 + $0x8] sm:$0xff]  ;;  %v259_v10 = vld [vmem:[%s1002_s3 + $0x18] sm:$0xff] }
   0x4   :  { %752 = vmatprep.subr.bf16.mxu0 %v751_v3  ;;  %v755_v9 = vpack.c.bf16 %v257_v7, %v256_v6  ;;  %v24_v11 = vld [vmem:[%s999_s0 + $0x18] sm:$0xff]  ;;  %v759_v12 = vpack.c.bf16 %v259_v10, %v258_v8  ;;  %v260_v13 = vld [vmem:[%s1002_s3 + $0x20] sm:$0xff]  ;;  %v261_v14 = vld [vmem:[%s1002_s3 + $0x28] sm:$0xff] }
   0x5   :  { %754 = vmatpush3.bf16.msra.mxu0 %v751_v3  ;;  %v25_v15 = vld [vmem:[%s999_s0 + $0x20] sm:$0xff] }
   0x6   :  { %756 = vmatprep.subr.bf16.mxu0 %v755_v9  ;;  %787 = vmatprep.subr.bf16.mxu1 %v755_v9 }
   0x7   :  { %795 = vmatpush3.bf16.msra.mxu1 %v755_v9 }
   0x8   :  { %672 = vmatmul.mubr.msk.f32.vlgmr.msra.gmra.mrb[0].mxu0 %vm46_vm0, %v22_v4 }
   0x9   :  { %674 = vmatprep.mubr.msk.f32.mxu0 %vm46_vm0, %v23_v5  ;;  %758 = vmatpush3.bf16.msra.mxu0 %v755_v9 }
   0xa   :  { %10 = vsyncpa [#allocation3], 0  ;;  %760 = vmatprep.subr.bf16.mxu0 %v759_v12  ;;  %v763_v16 = vpack.c.bf16 %v261_v14, %v260_v13  ;;  %v26_v17 = vld [vmem:[%s999_s0 + $0x28] sm:$0xff]  ;;  %v262_v18 = vld [vmem:[%s1002_s3 + $0x30] sm:$0xff]  ;;  %788 = vmatprep.subr.bf16.mxu1 %v759_v12 }
   0xb   :  { %v263_v19 = vld [vmem:[%s1002_s3 + $0x38] sm:$0xff]  ;;  %v27_v20 = vld [vmem:[%s999_s0 + $0x30] sm:$0xff]  ;;  %796 = vmatpush3.bf16.msra.mxu1 %v759_v12  ;;  %v264_v23 = vld [vmem:[%s1002_s3 + $0x40] sm:$0xff] }
   0xc   :  { %675 = vmatmul.mubr.msk.f32.gmra.mrb[2].mxu0 %vm46_vm0, %v24_v11  ;;  %v767_v21 = vpack.c.bf16 %v263_v19, %v262_v18  ;;  %v28_v22 = vld [vmem:[%s999_s0 + $0x38] sm:$0xff]  ;;  %v265_v24 = vld [vmem:[%s1002_s3 + $0x48] sm:$0xff]  ;;  %789 = vmatprep.subr.bf16.mxu1 %v763_v16  ;;  %v29_v25 = vld [vmem:[%s999_s0 + $0x40] sm:$0xff] }
   0xd   :  { %677 = vmatprep.mubr.msk.f32.mxu0 %vm46_vm0, %v25_v15  ;;  %762 = vmatpush3.bf16.msra.mxu0 %v759_v12  ;;  %v771_v26 = vpack.c.bf16 %v265_v24, %v264_v23  ;;  %v30_v27 = vld [vmem:[%s999_s0 + $0x48] sm:$0xff]  ;;  %v266_v28 = vld [vmem:[%s1002_s3 + $0x50] sm:$0xff]  ;;  %v267_v29 = vld [vmem:[%s1002_s3 + $0x58] sm:$0xff] }
   0xe   :  { %764 = vmatprep.subr.bf16.mxu0 %v763_v16  ;;  %v31_v30 = vld [vmem:[%s999_s0 + $0x50] sm:$0xff]  ;;  %v775_v31 = vpack.c.bf16 %v267_v29, %v266_v28  ;;  %v32_v32 = vld [vmem:[%s999_s0 + $0x58] sm:$0xff]  ;;  %v268_v33 = vld [vmem:[%s1002_s3 + $0x60] sm:$0xff] }
   0xf   :  { %797 = vmatpush3.bf16.msra.mxu1 %v763_v16  ;;  %v269_v34 = vld [vmem:[%s1002_s3 + $0x68] sm:$0xff]  ;;  %v33_v35 = vld [vmem:[%s999_s0 + $0x60] sm:$0xff]  ;;  %v35_v38 = vld [vmem:[%s999_s0 + $0x70] sm:$0xff] }
  0x10   :  { %678 = vmatmul.mubr.msk.f32.gmra.mrb[4].mxu0 %vm46_vm0, %v26_v17  ;;  %790 = vmatprep.subr.bf16.mxu1 %v767_v21  ;;  %v779_v36 = vpack.c.bf16 %v269_v34, %v268_v33  ;;  %v34_v37 = vld [vmem:[%s999_s0 + $0x68] sm:$0xff]  ;;  %v36_v39 = vld [vmem:[%s999_s0 + $0x78] sm:$0xff]  ;;  %v270_v40 = vld [vmem:[%s1002_s3 + $0x70] sm:$0xff] }
  0x11   :  { %680 = vmatprep.mubr.msk.f32.mxu0 %vm46_vm0, %v27_v20  ;;  %766 = vmatpush3.bf16.msra.mxu0 %v763_v16  ;;  %v271_v41 = vld [vmem:[%s1002_s3 + $0x78] sm:$0xff]  ;;  %v520_v43 = vld [vmem:[%s1001_s2] ss:$0 sm:$0xff] }
  0x12   :  { %768 = vmatprep.subr.bf16.mxu0 %v767_v21  ;;  %v783_v42 = vpack.c.bf16 %v271_v41, %v270_v40  ;;  %v537_v28 = vld [vmem:[%s1003_s4] ss:$0 sm:$0xff]  ;;  %s830_s4 = smov [#allocation2]  }
  0x13   :  { %798 = vmatpush3.bf16.msra.mxu1 %v767_v21  ;;  %s509_s9 = sshll.u32 %s830_s4, 4  ;;  %s510_s9 = int_to_ptr.vmem [resolvable:$true] %s509_s9 }
  0x14   :  { %681 = vmatmul.mubr.msk.f32.gmra.mrb[6].mxu0 %vm46_vm0, %v28_v22  ;;  %791 = vmatprep.subr.bf16.mxu1 %v771_v26  ;;  %s806_s10 = scalar_lea.vmem %s510_s9, 1024  ;;  %p811_p1 = scmp.lt.s32.totalorder %s510_s9, %s510_s9 }
  0x15   :  { %683 = vmatprep.mubr.msk.f32.mxu0 %vm46_vm0, %v29_v25  ;;  %770 = vmatpush3.bf16.msra.mxu0 %v767_v21  ;;  %p807_p0 = scmp.ne.s32.totalorder %s510_s9, %s806_s10  ;;  %p812_p2 = scmp.lt.s32.totalorder %s806_s10, %s806_s10 }
  0x16   :  { %772 = vmatprep.subr.bf16.mxu0 %v771_v26 }
  0x17   :  { %799 = vmatpush3.bf16.msra.mxu1 %v771_v26  ;;  %p813_p3 = por %p812_p2, %p811_p1 }
  0x18   :  { %684 = vmatmul.mubr.msk.f32.gmra.mrb[8].mxu0 %vm46_vm0, %v30_v27  ;;  %792 = vmatprep.subr.bf16.mxu1 %v775_v31 }
  0x19   :  { %686 = vmatprep.mubr.msk.f32.mxu0 %vm46_vm0, %v31_v30  ;;  %774 = vmatpush3.bf16.msra.mxu0 %v771_v26  ;;  %p814_p4 = pnand %p813_p3, %p807_p0 }
  0x1a   :  { %776 = vmatprep.subr.bf16.mxu0 %v775_v31 }
  0x1b   :  { %800 = vmatpush3.bf16.msra.mxu1 %v775_v31 }
  0x1c   :  { %687 = vmatmul.mubr.msk.f32.gmra.mrb[10].mxu0 %vm46_vm0, %v32_v32  ;;  %793 = vmatprep.subr.bf16.mxu1 %v779_v36 }
  0x1d   :  { %689 = vmatprep.mubr.msk.f32.mxu0 %vm46_vm0, %v33_v35  ;;  %778 = vmatpush3.bf16.msra.mxu0 %v775_v31 }
  0x1e   :  { %780 = vmatprep.subr.bf16.mxu0 %v779_v36 }
  0x1f   :  { %801 = vmatpush3.bf16.msra.mxu1 %v779_v36 }
  0x20   :  { %690 = vmatmul.mubr.msk.f32.gmra.mrb[12].mxu0 %vm46_vm0, %v34_v37  ;;  %794 = vmatprep.subr.bf16.mxu1 %v783_v42 }
  0x21   :  { %692 = vmatprep.mubr.msk.f32.mxu0 %vm46_vm0, %v35_v38  ;;  %782 = vmatpush3.bf16.msra.mxu0 %v779_v36 }
  0x22   :  { %784 = vmatprep.subr.bf16.mxu0 %v783_v42 }
  0x23   :  { %802 = vmatpush3.bf16.msra.mxu1 %v783_v42 }
  0x24   :  { %693 = vmatmul.mubr.msk.f32.gmra.mrb[14].mxu0 %vm46_vm0, %v36_v39 }
  0x25   :  { %786 = vmatpush3.bf16.msra.mxu0 %v783_v42 }
  0xdb   :  { %v673_v44 = vpop.f32.mrb[0].mxu0 }
  0xdc   :  { %v167_v45 = vadd.f32 %v673_v44, %v520_v43  ;;  %v161_v46 = vpop.f32.mrb[1].mxu0 }
  0xdd   :  { %v162_v47 = vadd.f32 %v520_v43, %v161_v46 }
  0xde   :  { %v241_v50 = vmax.f32 %v167_v45, 0.0 }
  0xdf   :  { %v240_v48 = vmax.f32 %v162_v47, 0.0  ;;  %v676_v49 = vpop.f32.mrb[2].mxu0 }
  0xe0   :  { %v177_v51 = vadd.f32 %v676_v49, %v520_v43  ;;  %v171_v52 = vpop.f32.mrb[3].mxu0 }
  0xe1   :  { %v172_v53 = vadd.f32 %v520_v43, %v171_v52  ;;  %727 = vmatprep.mubr.f32.mxu0 %v240_v48 }
  0xe2   :  { %728 = vmatmul.mubr.f32.vlgmr.msra.gmra.mrb[16].mxu0 %v241_v50  ;;  %v243_v56 = vmax.f32 %v177_v51, 0.0 }
  0xe3   :  { %v242_v54 = vmax.f32 %v172_v53, 0.0  ;;  %v679_v55 = vpop.f32.mrb[4].mxu0 }
  0xe4   :  { %v187_v57 = vadd.f32 %v679_v55, %v520_v43  ;;  %v181_v58 = vpop.f32.mrb[5].mxu0 }
  0xe5   :  { %v182_v59 = vadd.f32 %v520_v43, %v181_v58  ;;  %730 = vmatprep.mubr.f32.mxu0 %v242_v54 }
  0xe6   :  { %731 = vmatmul.mubr.f32.gmra.mrb[18].mxu0 %v243_v56  ;;  %v245_v62 = vmax.f32 %v187_v57, 0.0 }
  0xe7   :  { %v244_v60 = vmax.f32 %v182_v59, 0.0  ;;  %v682_v61 = vpop.f32.mrb[6].mxu0 }
  0xe8   :  { %v197_v63 = vadd.f32 %v682_v61, %v520_v43  ;;  %v191_v0 = vpop.f32.mrb[7].mxu0 }
  0xe9   :  { %733 = vmatprep.mubr.f32.mxu0 %v244_v60  ;;  %v192_v1 = vadd.f32 %v520_v43, %v191_v0 }
  0xea   :  { %734 = vmatmul.mubr.f32.gmra.mrb[20].mxu0 %v245_v62  ;;  %v247_v4 = vmax.f32 %v197_v63, 0.0 }
  0xeb   :  { %v685_v2 = vpop.f32.mrb[8].mxu0  ;;  %v246_v3 = vmax.f32 %v192_v1, 0.0 }
  0xec   :  { %v207_v5 = vadd.f32 %v685_v2, %v520_v43  ;;  %v201_v6 = vpop.f32.mrb[9].mxu0 }
  0xed   :  { %v202_v7 = vadd.f32 %v520_v43, %v201_v6  ;;  %736 = vmatprep.mubr.f32.mxu1 %v246_v3 }
  0xee   :  { %737 = vmatmul.mubr.f32.vlgmr.msra.gmra.mrb[0].mxu1 %v247_v4  ;;  %v249_v10 = vmax.f32 %v207_v5, 0.0 }
  0xef   :  { %v248_v8 = vmax.f32 %v202_v7, 0.0  ;;  %v688_v9 = vpop.f32.mrb[10].mxu0 }
  0xf0   :  { %v217_v11 = vadd.f32 %v688_v9, %v520_v43  ;;  %v211_v12 = vpop.f32.mrb[11].mxu0 }
  0xf1   :  { %v212_v13 = vadd.f32 %v520_v43, %v211_v12  ;;  %739 = vmatprep.mubr.f32.mxu1 %v248_v8 }
  0xf2   :  { %740 = vmatmul.mubr.f32.gmra.mrb[2].mxu1 %v249_v10  ;;  %v251_v16 = vmax.f32 %v217_v11, 0.0 }
  0xf3   :  { %v250_v14 = vmax.f32 %v212_v13, 0.0  ;;  %v691_v15 = vpop.f32.mrb[12].mxu0 }
  0xf4   :  { %v227_v17 = vadd.f32 %v691_v15, %v520_v43  ;;  %v221_v18 = vpop.f32.mrb[13].mxu0 }
  0xf5   :  { %v222_v19 = vadd.f32 %v520_v43, %v221_v18  ;;  %742 = vmatprep.mubr.f32.mxu1 %v250_v14 }
  0xf6   :  { %743 = vmatmul.mubr.f32.gmra.mrb[4].mxu1 %v251_v16  ;;  %v253_v22 = vmax.f32 %v227_v17, 0.0 }
  0xf7   :  { %v252_v20 = vmax.f32 %v222_v19, 0.0  ;;  %v694_v21 = vpop.f32.mrb[14].mxu0 }
  0xf8   :  { %v237_v23 = vadd.f32 %v694_v21, %v520_v43  ;;  %v231_v24 = vpop.f32.mrb[15].mxu0 }
  0xf9   :  { %v232_v25 = vadd.f32 %v520_v43, %v231_v24  ;;  %745 = vmatprep.mubr.f32.mxu1 %v252_v20 }
  0xfa   :  { %746 = vmatmul.mubr.f32.gmra.mrb[6].mxu1 %v253_v22  ;;  %v255_v27 = vmax.f32 %v237_v23, 0.0 }
  0xfb   :  { %v254_v26 = vmax.f32 %v232_v25, 0.0 }
  0xfd   :  { %748 = vmatprep.mubr.f32.mxu1 %v254_v26 }
  0xfe   :  { %749 = vmatmul.mubr.f32.gmra.mrb[8].mxu1 %v255_v27 }
 0x1b5   :  { %v729_v29 = vpop.f32.mrb[16].mxu0 }
 0x1b6   :  { %v351_v30 = vadd.f32 %v729_v29, %v537_v28  ;;  %v345_v31 = vpop.f32.mrb[17].mxu0 }
 0x1b7   :  { %v346_v32 = vadd.f32 %v537_v28, %v345_v31 }
 0x1b9   :  { %v573_v33 = vpack.c.bf16 %v351_v30, %v346_v32  ;;  %v732_v34 = vpop.f32.mrb[18].mxu0 }
 0x1ba   :  { %v361_v35 = vadd.f32 %v732_v34, %v537_v28  ;;  %v355_v36 = vpop.f32.mrb[19].mxu0 }
 0x1bb   :  { %574 = vst [vmem:[#allocation2] sm:$0xff] %v573_v33   ;;  %v356_v37 = vadd.f32 %v537_v28, %v355_v36 }
 0x1bd   :  { %v578_v38 = vpack.c.bf16 %v361_v35, %v356_v37  ;;  %v735_v39 = vpop.f32.mrb[20].mxu0 }
 0x1be   :  { %v371_v40 = vadd.f32 %v735_v39, %v537_v28  ;;  %v365_v41 = vpop.f32.mrb[21].mxu0 }
 0x1bf   :  { %610 = vst [vmem:[#allocation2 + $0x8] sm:$0xff] %v578_v38   ;;  %v366_v42 = vadd.f32 %v537_v28, %v365_v41 }
 0x1c1   :  { %v583_v43 = vpack.c.bf16 %v371_v40, %v366_v42  ;;  %v738_v44 = vpop.f32.mrb[0].mxu1 }
 0x1c2   :  { %v381_v45 = vadd.f32 %v738_v44, %v537_v28  ;;  %v375_v46 = vpop.f32.mrb[1].mxu1 }
 0x1c3   :  { %611 = vst [vmem:[#allocation2 + $0x10] sm:$0xff] %v583_v43   ;;  %v376_v47 = vadd.f32 %v537_v28, %v375_v46 }
 0x1c5   :  { %v588_v48 = vpack.c.bf16 %v381_v45, %v376_v47  ;;  %v741_v49 = vpop.f32.mrb[2].mxu1 }
 0x1c6   :  { %v391_v50 = vadd.f32 %v741_v49, %v537_v28  ;;  %v385_v51 = vpop.f32.mrb[3].mxu1 }
 0x1c7   :  { %612 = vst [vmem:[#allocation2 + $0x18] sm:$0xff] %v588_v48   ;;  %v386_v52 = vadd.f32 %v537_v28, %v385_v51 }
 0x1c9   :  { %v593_v53 = vpack.c.bf16 %v391_v50, %v386_v52  ;;  %v744_v54 = vpop.f32.mrb[4].mxu1 }
 0x1ca   :  { %v401_v55 = vadd.f32 %v744_v54, %v537_v28  ;;  %v395_v56 = vpop.f32.mrb[5].mxu1 }
 0x1cb   :  { %613 = vst [vmem:[#allocation2 + $0x20] sm:$0xff] %v593_v53   ;;  %v396_v57 = vadd.f32 %v537_v28, %v395_v56 }
 0x1cd   :  { %v598_v58 = vpack.c.bf16 %v401_v55, %v396_v57  ;;  %v747_v59 = vpop.f32.mrb[6].mxu1 }
 0x1ce   :  { %v411_v60 = vadd.f32 %v747_v59, %v537_v28  ;;  %v405_v61 = vpop.f32.mrb[7].mxu1 }
 0x1cf   :  { %614 = vst [vmem:[#allocation2 + $0x28] sm:$0xff] %v598_v58   ;;  %v406_v62 = vadd.f32 %v537_v28, %v405_v61 }
 0x1d1   :  { %v603_v63 = vpack.c.bf16 %v411_v60, %v406_v62  ;;  %v750_v0 = vpop.f32.mrb[8].mxu1 }
 0x1d2   :  { %v421_v1 = vadd.f32 %v750_v0, %v537_v28  ;;  %v415_v2 = vpop.f32.mrb[9].mxu1 }
 0x1d3   :  { %615 = vst [vmem:[#allocation2 + $0x30] sm:$0xff] %v603_v63   ;;  %v416_v3 = vadd.f32 %v537_v28, %v415_v2 }
 0x1d5   :  { %v608_v4 = vpack.c.bf16 %v421_v1, %v416_v3 }
 0x1d7   :  { %616 = vst [vmem:[#allocation2 + $0x38] sm:$0xff] %v608_v4  }
 0x1d8   :  { %817 = shalt.err (!%p814_p4)
}
 0x1d9   :  { %s818_s13 = scalar_lea.hbm %s1004_s5, 1024 }
 0x1da   :  { %p819_p5 = scmp.ne.s32.totalorder %s1004_s5, %s818_s13  ;;  %p822_p6 = scmp.lt.u32.totalorder %s818_s13, %s1004_s5 }
 0x1dc   :  { %p824_p7 = pnand %p822_p6, %p819_p5 }
 0x1de   :  { %827 = shalt.err (!%p824_p7)
}
 0x1df   :  { %s831_s18 = smov 64   ;;  %s832_s19 = smov 4  }
 0x1e0   :  { %515 = dma.vmem_to_hbm [thread:$0]  %s510_s9, 1024, %s1004_s5, [#allocation3], %s831_s18, %s831_s18, %s832_s19  }
 0x1e1   :  { %828 = dma.done.wait [#allocation3], 1024  }
 0x1e2   :  { %829 = vsyncadd [#allocation3], 4294966272 }
 0x1e3   :  { %519 = vsyncpa [#allocation3], 1 }

</bundles_post_ra>
